<compile_context>
chip_gen: v5e
topology: v5e:2x2
jax: 0.10.0
libtpu: 0.0.40
codegen_flags: <defaults>
</compile_context>

<pallas_src>
import jax
import jax.numpy as jnp
from jax.experimental import pallas as pl
from jax.experimental.pallas import tpu as pltpu


# ----------------------------------------------------------------------------
# Kernel: elementwise copy (+ dtype cast if out dtype differs).
# ----------------------------------------------------------------------------
def _identity_kernel(x_ref, o_ref):
    o_ref[...] = x_ref[...].astype(o_ref.dtype)


# ----------------------------------------------------------------------------
# Layout / tiling helpers (static Python, run at trace time).
# ----------------------------------------------------------------------------
_MAX_LANE_COLS = 32768             # lane-dense target width (multiple of 128)
_SMALL_COMBINED_BYTES = 1 << 20    # below this, XLA convert wins vs. a launch


def _vmem_budget_and_tile_target():
    """Return (vmem_limit_bytes, combined-per-step tile target bytes)."""
    vmem_cap = 64 << 20  # conservative default: assume v7x-sized VMEM
    try:
        info = pltpu.get_tpu_info()
        vmem_cap = int(getattr(info, "vmem_capacity_bytes", vmem_cap))
    except Exception:
        pass
    if vmem_cap >= (100 << 20):      # v5e / v6e: 128 MiB physical VMEM
        return 64 << 20, 16 << 20
    return 48 << 20, 8 << 20         # v7x: 64 MiB physical VMEM per TC


def _choose_layout(n):
    """Pick a lane-dense (rows, cols) 2-D view of a length-n flat buffer.

    Returns None if no view with a lane axis >= 128 exists (caller then uses
    XLA's convert-element-type)."""
    if n % 128 == 0:
        cols = (min(n, _MAX_LANE_COLS) // 128) * 128
        while n % cols != 0:      # terminates at 128, which divides n
            cols -= 128
        return n // cols, cols
    # n not 128-divisible: largest divisor of n in [128, _MAX_LANE_COLS] as the
    # (full-extent) lane axis -> at most 127 masked lanes per row.
    for cols in range(min(n, _MAX_LANE_COLS), 127, -1):
        if n % cols == 0:
            return n // cols, cols
    # TODO(synk): prime-ish n has no lane-dense view; an Element-offset
    # overlapping-block copy could keep it on the Pallas path.
    return None


def _choose_block_rows(rows, cols, in_bytes, out_bytes, tile_target):
    """Row-tile size: ~tile_target COMBINED (in+out) bytes per step, aligned to
    the packed sublane count, and capped so the grid has >=2 (ideally >=4)
    steps when possible (lets v7x's two TensorCores split the copy)."""
    # Packed sublane count of the narrower dtype: 8 (f32), 16 (bf16), 32 (i8).
    pack = max(8, 32 // min(in_bytes, out_bytes))
    per_row = cols * (in_bytes + out_bytes)
    br = max(1, tile_target // per_row)
    br = max((br // pack) * pack, pack)
    for min_steps in (4, 2):
        cap = (rows // min_steps // pack) * pack   # br <= rows//min_steps
        if cap >= pack:
            br = min(br, cap)
            break
    return rows if br >= rows else br


# ----------------------------------------------------------------------------
# Tiled Pallas HBM->HBM copy with optional dtype cast.
# ----------------------------------------------------------------------------
def _identity_copy(x, out_dtype, *, min_pallas_bytes=_SMALL_COMBINED_BYTES):
    out_dtype = jnp.dtype(out_dtype)
    orig_shape = x.shape
    n = x.size
    in_bytes = jnp.dtype(x.dtype).itemsize
    out_bytes = out_dtype.itemsize

    # Tiny tensors: kernel launch + pipeline prologue dwarfs the copy; XLA's
    # convert-element-type is already at roofline here.
    if n == 0 or n * (in_bytes + out_bytes) < min_pallas_bytes:
        return x.astype(out_dtype)

    layout = _choose_layout(n)
    if layout is None:
        # TODO(synk): no lane-dense 2-D view available; fall back to XLA cast.
        return x.astype(out_dtype)
    rows, cols = layout
    x2d = x.reshape(rows, cols)

    vmem_limit, tile_target = _vmem_budget_and_tile_target()
    br = _choose_block_rows(rows, cols, in_bytes, out_bytes, tile_target)
    grid = (pl.cdiv(rows, br),)

    y2d = pl.pallas_call(
        _identity_kernel,
        out_shape=jax.ShapeDtypeStruct((rows, cols), out_dtype),
        grid_spec=pltpu.PrefetchScalarGridSpec(
            num_scalar_prefetch=0,
            grid=grid,
            # TODO(synk): sweep pipeline_mode=pl.Buffered(3) on the input spec
            # (expected 0-5%); omitted to keep the build maximally portable.
            in_specs=[pl.BlockSpec((br, cols), lambda i: (i, 0))],
            out_specs=pl.BlockSpec((br, cols), lambda i: (i, 0)),
        ),
        compiler_params=pltpu.CompilerParams(
            dimension_semantics=("parallel",),
            vmem_limit_bytes=vmem_limit,
        ),
        cost_estimate=pl.CostEstimate(
            flops=0,
            transcendentals=0,
            bytes_accessed=n * (in_bytes + out_bytes),
        ),
    )(x2d)
    return y2d.reshape(orig_shape)


# ----------------------------------------------------------------------------
# Module wrapper.
# ----------------------------------------------------------------------------
class IdentityDict:
    """JAX/Pallas port of dictionary_learning.dictionary.IdentityDict.

    The identity dictionary: encode/decode/forward return the input,
    optionally cast to self.dtype. No learnable parameters.
    """

    def __init__(self, activation_dim=None, dtype=None, device=None):
        self.activation_dim = activation_dim
        self.dict_size = activation_dim
        self.dtype = dtype
        # TODO(synk): torch `.to(device)` has no kernel equivalent; device
        # placement in JAX is handled by sharding/jit, not inside the kernel.
        self.device = device

    def _run(self, x):
        out_dtype = jnp.dtype(self.dtype) if self.dtype is not None else x.dtype
        if out_dtype == x.dtype:
            # Zero-copy fast path: identity without a cast is a true no-op.
            return x
        return _identity_copy(x, out_dtype)

    def encode(self, x):
        return self._run(x)

    def decode(self, f):
        return self._run(f)

    def forward(self, x, output_features=False, ghost_mask=None):
        y = self._run(x)
        if output_features:
            return (y, y)
        return y

    __call__ = forward

    @classmethod
    def from_pretrained(cls, activation_dim, path=None, dtype=None, device=None):
        return cls(activation_dim, dtype=dtype, device=device)


if __name__ == "__main__":
    key = jax.random.PRNGKey(0)
    batch, seq, activation_dim = 2, 8, 32
    x = jax.random.normal(key, (batch, seq, activation_dim), dtype=jnp.float32)

    # 1) Module-level cast path at the tiny module-consistent shape
    #    (small-input dispatch -> XLA convert).
    d_cast = IdentityDict(activation_dim=activation_dim, dtype=jnp.bfloat16)
    y = jax.block_until_ready(d_cast(x))
    assert y.shape == x.shape and y.dtype == jnp.bfloat16
    assert jnp.allclose(y.astype(jnp.float32),
                        x.astype(jnp.bfloat16).astype(jnp.float32))

    y2, f2 = d_cast(x, output_features=True)
    jax.block_until_ready((y2, f2))
    assert jnp.allclose(y2.astype(jnp.float32), y.astype(jnp.float32))
    assert jnp.allclose(f2.astype(jnp.float32), y.astype(jnp.float32))
    assert jnp.allclose(
        jax.block_until_ready(d_cast.encode(x)).astype(jnp.float32),
        y.astype(jnp.float32))
    assert jnp.allclose(
        jax.block_until_ready(d_cast.decode(x)).astype(jnp.float32),
        y.astype(jnp.float32))

    # 2) Force the Pallas kernel at the small shape (bypass small-dispatch):
    #    f32 -> bf16 cast and same-dtype pure copy.
    y_k = jax.block_until_ready(
        _identity_copy(x, jnp.bfloat16, min_pallas_bytes=0))
    assert y_k.dtype == jnp.bfloat16
    assert jnp.allclose(y_k.astype(jnp.float32), y.astype(jnp.float32))
    y_copy = jax.block_until_ready(
        _identity_copy(x, jnp.float32, min_pallas_bytes=0))
    assert y_copy.dtype == x.dtype and jnp.allclose(y_copy, x)

    # 3) Medium tensor through the normal module path: exercises the tiled,
    #    multi-step (megacore-splittable) Pallas copy.
    xm = jax.random.normal(jax.random.PRNGKey(1), (2048, 1024), dtype=jnp.float32)
    ym = jax.block_until_ready(d_cast(xm))
    assert ym.shape == xm.shape and ym.dtype == jnp.bfloat16
    assert jnp.allclose(ym.astype(jnp.float32),
                        xm.astype(jnp.bfloat16).astype(jnp.float32))

    # 4) Non-128-divisible size through the lane-dense fallback (forced).
    xr = jax.random.normal(jax.random.PRNGKey(2), (3, 50), dtype=jnp.float32)
    yr = jax.block_until_ready(
        _identity_copy(xr, jnp.bfloat16, min_pallas_bytes=0))
    assert yr.shape == xr.shape and yr.dtype == jnp.bfloat16
    assert jnp.allclose(yr.astype(jnp.float32),
                        xr.astype(jnp.bfloat16).astype(jnp.float32))

    # 5) No-cast fast path: true no-op, returns the input array itself.
    d_id = IdentityDict(activation_dim=activation_dim)
    y_id = jax.block_until_ready(d_id(x))
    assert y_id is x

    print("KERNEL_OK")
</pallas_src>

<mosaic_0001>
module attributes {stable_mosaic.version = 11 : i64} {
  func.func @_identity_kernel(%arg0: i32, %arg1: memref<1x512xf32, #tpu.memory_space<vmem>>, %arg2: memref<1x512xbf16, #tpu.memory_space<vmem>>) attributes {dimension_semantics = [#tpu.dimension_semantics<parallel>], iteration_bounds = array<i64: 1>, scalar_prefetch = 0 : i64, scratch_operands = 0 : i64, tpu.core_type = #tpu.core_type<tc>, window_params = [{transform_indices = @transform_0, window_bounds = array<i64: 1, 512>}, {transform_indices = @transform_1, window_bounds = array<i64: 1, 512>}]} {
    %c0 = arith.constant 0 : index
    %c0_0 = arith.constant 0 : index
    %0 = vector.load %arg1[%c0, %c0_0] : memref<1x512xf32, #tpu.memory_space<vmem>>, vector<1x512xf32>
    %1 = arith.truncf %0 : vector<1x512xf32> to vector<1x512xbf16>
    %c0_1 = arith.constant 0 : index
    %c0_2 = arith.constant 0 : index
    %2 = vector.load %arg2[%c0_1, %c0_2] : memref<1x512xbf16, #tpu.memory_space<vmem>>, vector<1x512xbf16>
    tpu.vector_store %arg2[%c0_1, %c0_2], %1 {strides = array<i32>} : memref<1x512xbf16, #tpu.memory_space<vmem>>, vector<1x512xbf16>,
    return
  }
  func.func @transform_0(%arg0: i32) -> (i32, i32) {
    %c0_i32 = arith.constant 0 : i32
    %c0_i32_0 = arith.constant 0 : i32
    return %arg0, %c0_i32 : i32, i32
  }
  func.func @transform_1(%arg0: i32) -> (i32, i32) {
    %c0_i32 = arith.constant 0 : i32
    %c0_i32_0 = arith.constant 0 : i32
    return %arg0, %c0_i32 : i32, i32
  }
}

</mosaic_0001>

<bundles_post_ra>
// kernel: tpu_custom_call.1
= control target key start
LH: loop header
LB: loop body
LE: loop exit
PB: predicated region body
PF: predicated region fallthrough
CT: control target
= control target key end

     0   :  { %6 = vsyncpa [#allocation3], 0  ;;  %s174_s0 = inlined_call_operand.hbm [shape: f32[1,512], index: 0, kind: input, shape index: {}]   ;;  %s175_s1 = inlined_call_operand.hbm [shape: bf16[1,512], index: 1, kind: output, shape index: {}]  }
   0x1   :  { %7 = vsyncpa [#allocation4], 0  ;;  %s13_s8 = sshll.u32 %s174_s0, 4  ;;  %s140_s9 = smov [#allocation2]   ;;  %s14_s8 = int_to_ptr.hbm [resolvable:$true] %s13_s8 }
   0x2   :  { %s15_s10 = sshll.u32 %s140_s9, 4  ;;  %s16_s10 = int_to_ptr.vmem [resolvable:$true] %s15_s10 }
   0x3   :  { %18 = dma.hbm_to_vmem [thread:$0]  %s14_s8, 64, %s16_s10, [#allocation3]  }
   0x4   :  { %136 = dma.done.wait [#allocation3], 64  }
   0x5   :  { %137 = vsyncadd [#allocation3], 4294967232  ;;  %vm40_vm0 = vcmask 1040384   ;;  %vm54_vm1 = vcmask 1041409   ;;  %vm52_vm2 = vsmask.f32 256 }
   0x6   :  { %vm55_vm3 = vsmask.f32 1280  ;;  %vm53_vm4 = vmand %vm40_vm0, %vm52_vm2  ;;  %vm44_vm5 = vcmask 1042434   ;;  %vm59_vm7 = vsmask.f32 2304  ;;  %vm62_vm10 = vcmask 1043459  }
   0x7   :  { %vm56_vm6 = vmand %vm54_vm1, %vm55_vm3  ;;  %v23_v0 = vld [vmem:[#allocation2] sm:$0xf]  ;;  %vm63_vm11 = vsmask.f32 3328  ;;  %vm48_vm14 = vcmask 1041408   ;;  %s141_s0 = smov [#allocation5]  }
   0x8   :  { %vm57_vm8 = vmor %vm56_vm6, %vm53_vm4  ;;  %v25_v1 = vperm.slane %v23_v0, 0  ;;  %v26_v2 = vperm.slane %v23_v0, 1  ;;  %v27_v3 = vperm.slane %v23_v0, 2  ;;  %v28_v4 = vperm.slane %v23_v0, 3  ;;  %s74_s11 = sshll.u32 %s141_s0, 4  ;;  %s76_s14 = sshll.u32 %s175_s1, 4  ;;  %s75_s11 = int_to_ptr.vmem [resolvable:$true] %s74_s11  ;;  %s77_s14 = int_to_ptr.hbm [resolvable:$true] %s76_s14 }
   0x9   :  { %vm60_vm9 = vmand %vm44_vm5, %vm59_vm7  ;;  %v66_v12 = vld [vmem:[#allocation5] sm:$0xf] }
   0xa   :  { %vm157_vm12 = vmor %vm60_vm9, %vm57_vm8  ;;  %v33_v6 = vpack.c.bf16 %v26_v2, %v25_v1  ;;  %v34_v7 = vpack.c.bf16 %v28_v4, %v27_v3 }
   0xb   :  { %vm161_vm13 = vmand %vm62_vm10, %vm63_vm11 }
   0xc   :  { %v37_v9 = vrot.slane %v33_v6, 3  ;;  %v38_v10 = vrot.slane %v34_v7, 6  ;;  %v39_v11 = vrot.slane %v34_v7, 1  ;;  %vm65_vm15 = vmor %vm161_vm13, %vm157_vm12 }
   0xe   :  { %v43_v13 = vsel %vm40_vm0, %v33_v6, %v37_v9  ;;  %v47_v14 = vsel %vm44_vm5, %v38_v10, %v39_v11 }
   0xf   :  { %v49_v15 = vsel %vm48_vm14, %v43_v13, %v47_v14 }
  0x10   :  { %v67_v16 = vsel %vm65_vm15, %v49_v15, %v66_v12 }
  0x11   :  { %68 = vst [vmem:[#allocation5] sm:$0xf] %v67_v16 }
  0x12   :  { %79 = dma.vmem_to_hbm [thread:$0]  %s75_s11, 64, %s77_s14, [#allocation4]  }
  0x13   :  { %138 = dma.done.wait [#allocation4], 64  }
  0x14   :  { %139 = vsyncadd [#allocation4], 4294967232 }
  0x15   :  { %84 = vsyncpa [#allocation3], 1 }
  0x16   :  { %85 = vsyncpa [#allocation4], 1 }

</bundles_post_ra>
